<compile_context>
chip_gen: v7x
topology: tpu7x:2x2x1
jax: 0.10.0
libtpu: 0.0.40
codegen_flags: <defaults>
</compile_context>

<pallas_src>
import functools

import jax
import jax.numpy as jnp
from jax.experimental import pallas as pl
from jax.experimental.pallas import tpu as pltpu

_P = 128  # lane-width padding for hidden / output feature dims


def _round_up(n, m):
    return ((n + m - 1) // m) * m


# ---------------------------------------------------------------------------
# Activation map (matches torch defaults, e.g. LeakyReLU negative_slope=0.01)
# ---------------------------------------------------------------------------
def _apply_act(h, name):
    if name == "LR":
        return jnp.where(h > 0, h, 0.01 * h)
    if name == "T":
        return jnp.tanh(h)
    if name == "R":
        return jnp.maximum(h, 0.0)
    if name == "S":
        return jax.nn.sigmoid(h)
    raise ValueError(f"unknown activation {name!r}")


# ---------------------------------------------------------------------------
# Kernel: one TM-row batch tile through the whole MLP.
#   x_ref  : (TM, in_dim)   current batch tile, UNPADDED lanes
#   w_ref  : (L, P, P)      all weights, zero-padded, bf16, VMEM-resident
#   b_ref  : (L, 1, P)      all biases, zero-padded, f32, VMEM-resident
#   out_ref: (TM, P)        lane-dense output tile (real cols = out_dim)
# ---------------------------------------------------------------------------
def _mlp_kernel(x_ref, w_ref, b_ref, out_ref, *, acts, n_layers, in_dim):
    # Layer 0: contract the unpadded input against the top in_dim rows of w[0].
    w0 = w_ref[0]  # (P, P) bf16
    h = jnp.dot(
        x_ref[...].astype(jnp.bfloat16),
        w0[:in_dim, :],
        preferred_element_type=jnp.float32,
    ) + b_ref[0]
    h = _apply_act(h, acts[0])
    for i in range(1, n_layers):
        h = jnp.dot(
            h.astype(jnp.bfloat16),
            w_ref[i],
            preferred_element_type=jnp.float32,
        ) + b_ref[i]
        if i < n_layers - 1:
            h = _apply_act(h, acts[i])
    out_ref[...] = h.astype(out_ref.dtype)


@functools.partial(jax.jit, static_argnames=("acts", "tm_max"))
def _net_forward_impl(x, params, *, acts, tm_max):
    batch, in_dim = x.shape
    n_layers = len(params)
    out_dim = params[-1][0].shape[1]

    dims = [in_dim] + [w.shape[1] for w, _ in params]
    if max(dims) > _P:
        # TODO(synk): feature dims > 128 would need K/N tiling of the weight slab.
        raise ValueError(f"feature dims {dims} must all be <= {_P}")

    # ---- batch tile: as large as possible, but at least 2 balanced tiles once
    # the batch can be split, so v7x's 2 TensorCores both get work.
    if batch < 16:
        tm = batch  # single block == full batch dim (always a legal block)
    else:
        tm = min(tm_max, _round_up(-(-batch // 2), 8))
    grid = (pl.cdiv(batch, tm),)

    # ---- pack parameters into lane-dense, zero-padded, VMEM-resident slabs.
    # Weights in bf16 (native MXU path, half the DMA); biases stay f32 so
    # bias-add + activations run in f32.
    w_slab = jnp.zeros((n_layers, _P, _P), jnp.bfloat16)
    b_slab = jnp.zeros((n_layers, 1, _P), jnp.float32)
    for i, (w, b) in enumerate(params):
        w = jnp.asarray(w, jnp.float32)
        b = jnp.ravel(jnp.asarray(b, jnp.float32))
        w_slab = w_slab.at[i, : w.shape[0], : w.shape[1]].set(
            w.astype(jnp.bfloat16)
        )
        b_slab = b_slab.at[i, 0, : b.shape[0]].set(b)

    n_transc = sum(1 for a in acts if a in ("T", "S"))
    cost = pl.CostEstimate(
        flops=2 * batch * (in_dim * _P + (n_layers - 1) * _P * _P),
        transcendentals=batch * _P * n_transc,
        bytes_accessed=4 * (x.size + batch * _P + b_slab.size) + 2 * w_slab.size,
    )

    kernel = functools.partial(
        _mlp_kernel, acts=acts, n_layers=n_layers, in_dim=in_dim
    )

    out_pad = pl.pallas_call(
        kernel,
        out_shape=jax.ShapeDtypeStruct((batch, _P), jnp.float32),
        grid=grid,
        in_specs=[
            pl.BlockSpec((tm, in_dim), lambda i: (i, 0)),           # batch tile (unpadded)
            pl.BlockSpec((n_layers, _P, _P), lambda i: (0, 0, 0)),  # weights: resident
            pl.BlockSpec((n_layers, 1, _P), lambda i: (0, 0, 0)),   # biases:  resident
        ],
        out_specs=pl.BlockSpec((tm, _P), lambda i: (i, 0)),
        compiler_params=pltpu.CompilerParams(
            dimension_semantics=("parallel",),
        ),
        cost_estimate=cost,
    )(x.astype(jnp.float32), w_slab, b_slab)

    # Under jit this slice fuses with the consumer (no extra padded-HBM pass).
    return out_pad[:, :out_dim].astype(x.dtype)


def net_forward(x, params, acts, *, tm_max=512):
    """x: (batch, input_dim). params: list of (W, b) with W (in, out), b (1, out)
    or (out,). acts: activation names, one per hidden layer (or a single name,
    broadcast like the torch module)."""
    n_layers = len(params)
    n_hidden = n_layers - 1
    acts = tuple(acts)
    if len(acts) == 1:  # torch Net broadcasts a single activation
        acts = acts * n_hidden
    if len(acts) != n_hidden:
        raise ValueError(
            f"need {n_hidden} activations (one per hidden layer), got {len(acts)}"
        )
    params = tuple((jnp.asarray(w), jnp.asarray(b)) for w, b in params)
    return _net_forward_impl(x, params, acts=acts, tm_max=tm_max)


# ---------------------------------------------------------------------------
# Pure-JAX reference (mirrors the PyTorch forward exactly, f32 throughout)
# ---------------------------------------------------------------------------
def net_forward_ref(x, params, acts):
    h = x
    n_layers = len(params)
    for i, (w, b) in enumerate(params):
        h = h @ jnp.asarray(w, jnp.float32) + jnp.reshape(
            jnp.asarray(b, jnp.float32), (1, -1)
        )
        if i < n_layers - 1:
            h = _apply_act(h, acts[i])
    return h


# ---------------------------------------------------------------------------
# Deterministic parameter construction (synthetic weights, no checkpoint)
# ---------------------------------------------------------------------------
def make_params(key, input_dim, nods, output_dim):
    dims = [input_dim] + list(nods) + [output_dim]
    params = []
    for i in range(len(dims) - 1):
        key, kw, kb = jax.random.split(key, 3)
        fan_in = dims[i]
        scale = 1.0 / jnp.sqrt(fan_in)
        w = jax.random.uniform(
            kw, (dims[i], dims[i + 1]), jnp.float32, -scale, scale
        )
        b = jax.random.uniform(kb, (1, dims[i + 1]), jnp.float32, -scale, scale)
        params.append((w, b))
    return params


if __name__ == "__main__":
    # Net(nods=[32, 32, 32, 32], a_f=['LR', 'T', 'R', 'S'], input_dim=16, output_dim=8)
    nods = [32, 32, 32, 32]
    a_f = ["LR", "T", "R", "S"]
    input_dim = 16
    output_dim = 8

    key = jax.random.PRNGKey(0)
    kx, kp = jax.random.split(key)
    params = make_params(kp, input_dim, nods, output_dim)

    # bf16 matmul operands (f32 accumulation) -> loosened tolerance vs f32 ref.
    ATOL = RTOL = 2e-2

    for batch in (8, 300, 1024):  # tiny / partial-tile / 2-tile pipelined grids
        x = jax.random.normal(kx, (batch, input_dim), jnp.float32)
        out = jax.block_until_ready(net_forward(x, params, a_f))
        ref = net_forward_ref(x, params, a_f)
        assert out.shape == (batch, output_dim), out.shape
        assert jnp.allclose(out, ref, atol=ATOL, rtol=RTOL), (
            f"batch={batch}: max abs err {jnp.max(jnp.abs(out - ref))}"
        )

    print("KERNEL_OK")
</pallas_src>

<mosaic_0001>
module attributes {stable_mosaic.version = 11 : i64} {
  func.func @_mlp_kernel(%arg0: i32, %arg1: memref<8x16xf32, #tpu.memory_space<vmem>>, %arg2: memref<5x128x128xbf16, #tpu.memory_space<vmem>>, %arg3: memref<5x1x128xf32, #tpu.memory_space<vmem>>, %arg4: memref<8x128xf32, #tpu.memory_space<vmem>>) attributes {dimension_semantics = [#tpu.dimension_semantics<parallel>], iteration_bounds = array<i64: 1>, scalar_prefetch = 0 : i64, scratch_operands = 0 : i64, tpu.core_type = #tpu.core_type<tc>, window_params = [{transform_indices = @transform_0, window_bounds = array<i64: 8, 16>}, {pipeline_mode = #tpu.pipeline_mode<synchronous>, transform_indices = @transform_1, window_bounds = array<i64: 5, 128, 128>}, {pipeline_mode = #tpu.pipeline_mode<synchronous>, transform_indices = @transform_2, window_bounds = array<i64: 5, 1, 128>}, {transform_indices = @transform_3, window_bounds = array<i64: 8, 128>}]} {
    %c0 = arith.constant 0 : index
    %c0_0 = arith.constant 0 : index
    %c0_1 = arith.constant 0 : index
    %0 = vector.load %arg2[%c0, %c0_0, %c0_1] : memref<5x128x128xbf16, #tpu.memory_space<vmem>>, vector<1x128x128xbf16>
    %1 = vector.shape_cast %0 : vector<1x128x128xbf16> to vector<128x128xbf16>
    %c0_2 = arith.constant 0 : index
    %c0_3 = arith.constant 0 : index
    %2 = vector.load %arg1[%c0_2, %c0_3] : memref<8x16xf32, #tpu.memory_space<vmem>>, vector<8x16xf32>
    %3 = arith.truncf %2 : vector<8x16xf32> to vector<8x16xbf16>
    %4 = vector.extract_strided_slice %1 {offsets = [0, 0], sizes = [16, 128], strides = [1, 1]} : vector<128x128xbf16> to vector<16x128xbf16>
    %cst = arith.constant dense<0.000000e+00> : vector<8x128xf32>
    %5 = tpu.matmul %3, %4, %cst {dimension_numbers = #tpu.dot_dimension_numbers<[1], [0], [0], [1], [0, 0, 1, 1], [], []>} : vector<8x16xbf16>, vector<16x128xbf16>, vector<8x128xf32> -> vector<8x128xf32>
    %c0_4 = arith.constant 0 : index
    %c0_5 = arith.constant 0 : index
    %c0_6 = arith.constant 0 : index
    %6 = vector.load %arg3[%c0_4, %c0_5, %c0_6] : memref<5x1x128xf32, #tpu.memory_space<vmem>>, vector<1x1x128xf32>
    %7 = vector.shape_cast %6 : vector<1x1x128xf32> to vector<1x128xf32>
    %8 = vector.broadcast %7 : vector<1x128xf32> to vector<8x128xf32>
    %9 = arith.addf %5, %8 : vector<8x128xf32>
    %cst_7 = arith.constant 0.000000e+00 : f32
    %10 = vector.broadcast %cst_7 : f32 to vector<8x128xf32>
    %11 = arith.cmpf ogt, %9, %10 : vector<8x128xf32>
    %cst_8 = arith.constant 0.00999999977 : f32
    %12 = vector.broadcast %cst_8 : f32 to vector<8x128xf32>
    %13 = arith.mulf %12, %9 : vector<8x128xf32>
    %14 = arith.select %11, %9, %13 : vector<8x128xi1>, vector<8x128xf32>
    %15 = arith.truncf %14 : vector<8x128xf32> to vector<8x128xbf16>
    %c1 = arith.constant 1 : index
    %c0_9 = arith.constant 0 : index
    %c0_10 = arith.constant 0 : index
    %16 = vector.load %arg2[%c1, %c0_9, %c0_10] : memref<5x128x128xbf16, #tpu.memory_space<vmem>>, vector<1x128x128xbf16>
    %17 = vector.shape_cast %16 : vector<1x128x128xbf16> to vector<128x128xbf16>
    %cst_11 = arith.constant dense<0.000000e+00> : vector<8x128xf32>
    %18 = tpu.matmul %15, %17, %cst_11 {dimension_numbers = #tpu.dot_dimension_numbers<[1], [0], [0], [1], [0, 0, 1, 1], [], []>} : vector<8x128xbf16>, vector<128x128xbf16>, vector<8x128xf32> -> vector<8x128xf32>
    %c1_12 = arith.constant 1 : index
    %c0_13 = arith.constant 0 : index
    %c0_14 = arith.constant 0 : index
    %19 = vector.load %arg3[%c1_12, %c0_13, %c0_14] : memref<5x1x128xf32, #tpu.memory_space<vmem>>, vector<1x1x128xf32>
    %20 = vector.shape_cast %19 : vector<1x1x128xf32> to vector<1x128xf32>
    %21 = vector.broadcast %20 : vector<1x128xf32> to vector<8x128xf32>
    %22 = arith.addf %18, %21 : vector<8x128xf32>
    %23 = math.tanh %22 : vector<8x128xf32>
    %24 = arith.truncf %23 : vector<8x128xf32> to vector<8x128xbf16>
    %c2 = arith.constant 2 : index
    %c0_15 = arith.constant 0 : index
    %c0_16 = arith.constant 0 : index
    %25 = vector.load %arg2[%c2, %c0_15, %c0_16] : memref<5x128x128xbf16, #tpu.memory_space<vmem>>, vector<1x128x128xbf16>
    %26 = vector.shape_cast %25 : vector<1x128x128xbf16> to vector<128x128xbf16>
    %cst_17 = arith.constant dense<0.000000e+00> : vector<8x128xf32>
    %27 = tpu.matmul %24, %26, %cst_17 {dimension_numbers = #tpu.dot_dimension_numbers<[1], [0], [0], [1], [0, 0, 1, 1], [], []>} : vector<8x128xbf16>, vector<128x128xbf16>, vector<8x128xf32> -> vector<8x128xf32>
    %c2_18 = arith.constant 2 : index
    %c0_19 = arith.constant 0 : index
    %c0_20 = arith.constant 0 : index
    %28 = vector.load %arg3[%c2_18, %c0_19, %c0_20] : memref<5x1x128xf32, #tpu.memory_space<vmem>>, vector<1x1x128xf32>
    %29 = vector.shape_cast %28 : vector<1x1x128xf32> to vector<1x128xf32>
    %30 = vector.broadcast %29 : vector<1x128xf32> to vector<8x128xf32>
    %31 = arith.addf %27, %30 : vector<8x128xf32>
    %cst_21 = arith.constant 0.000000e+00 : f32
    %32 = vector.broadcast %cst_21 : f32 to vector<8x128xf32>
    %33 = arith.maximumf %31, %32 : vector<8x128xf32>
    %34 = arith.truncf %33 : vector<8x128xf32> to vector<8x128xbf16>
    %c3 = arith.constant 3 : index
    %c0_22 = arith.constant 0 : index
    %c0_23 = arith.constant 0 : index
    %35 = vector.load %arg2[%c3, %c0_22, %c0_23] : memref<5x128x128xbf16, #tpu.memory_space<vmem>>, vector<1x128x128xbf16>
    %36 = vector.shape_cast %35 : vector<1x128x128xbf16> to vector<128x128xbf16>
    %cst_24 = arith.constant dense<0.000000e+00> : vector<8x128xf32>
    %37 = tpu.matmul %34, %36, %cst_24 {dimension_numbers = #tpu.dot_dimension_numbers<[1], [0], [0], [1], [0, 0, 1, 1], [], []>} : vector<8x128xbf16>, vector<128x128xbf16>, vector<8x128xf32> -> vector<8x128xf32>
    %c3_25 = arith.constant 3 : index
    %c0_26 = arith.constant 0 : index
    %c0_27 = arith.constant 0 : index
    %38 = vector.load %arg3[%c3_25, %c0_26, %c0_27] : memref<5x1x128xf32, #tpu.memory_space<vmem>>, vector<1x1x128xf32>
    %39 = vector.shape_cast %38 : vector<1x1x128xf32> to vector<1x128xf32>
    %40 = vector.broadcast %39 : vector<1x128xf32> to vector<8x128xf32>
    %41 = arith.addf %37, %40 : vector<8x128xf32>
    %42 = arith.negf %41 : vector<8x128xf32>
    %43 = math.exp %42 : vector<8x128xf32>
    %cst_28 = arith.constant 1.000000e+00 : f32
    %44 = vector.broadcast %cst_28 : f32 to vector<8x128xf32>
    %45 = arith.addf %44, %43 : vector<8x128xf32>
    %46 = arith.divf %44, %45 : vector<8x128xf32>
    %47 = arith.truncf %46 : vector<8x128xf32> to vector<8x128xbf16>
    %c4 = arith.constant 4 : index
    %c0_29 = arith.constant 0 : index
    %c0_30 = arith.constant 0 : index
    %48 = vector.load %arg2[%c4, %c0_29, %c0_30] : memref<5x128x128xbf16, #tpu.memory_space<vmem>>, vector<1x128x128xbf16>
    %49 = vector.shape_cast %48 : vector<1x128x128xbf16> to vector<128x128xbf16>
    %cst_31 = arith.constant dense<0.000000e+00> : vector<8x128xf32>
    %50 = tpu.matmul %47, %49, %cst_31 {dimension_numbers = #tpu.dot_dimension_numbers<[1], [0], [0], [1], [0, 0, 1, 1], [], []>} : vector<8x128xbf16>, vector<128x128xbf16>, vector<8x128xf32> -> vector<8x128xf32>
    %c4_32 = arith.constant 4 : index
    %c0_33 = arith.constant 0 : index
    %c0_34 = arith.constant 0 : index
    %51 = vector.load %arg3[%c4_32, %c0_33, %c0_34] : memref<5x1x128xf32, #tpu.memory_space<vmem>>, vector<1x1x128xf32>
    %52 = vector.shape_cast %51 : vector<1x1x128xf32> to vector<1x128xf32>
    %53 = vector.broadcast %52 : vector<1x128xf32> to vector<8x128xf32>
    %54 = arith.addf %50, %53 : vector<8x128xf32>
    %c0_35 = arith.constant 0 : index
    %c0_36 = arith.constant 0 : index
    %55 = vector.load %arg4[%c0_35, %c0_36] : memref<8x128xf32, #tpu.memory_space<vmem>>, vector<8x128xf32>
    tpu.vector_store %arg4[%c0_35, %c0_36], %54 {strides = array<i32>} : memref<8x128xf32, #tpu.memory_space<vmem>>, vector<8x128xf32>,
    return
  }
  func.func @transform_0(%arg0: i32) -> (i32, i32) {
    %c0_i32 = arith.constant 0 : i32
    %c0_i32_0 = arith.constant 0 : i32
    return %arg0, %c0_i32 : i32, i32
  }
  func.func @transform_1(%arg0: i32) -> (i32, i32, i32) {
    %c0_i32 = arith.constant 0 : i32
    %c0_i32_0 = arith.constant 0 : i32
    %c0_i32_1 = arith.constant 0 : i32
    %c0_i32_2 = arith.constant 0 : i32
    return %c0_i32, %c0_i32_0, %c0_i32_1 : i32, i32, i32
  }
  func.func @transform_2(%arg0: i32) -> (i32, i32, i32) {
    %c0_i32 = arith.constant 0 : i32
    %c0_i32_0 = arith.constant 0 : i32
    %c0_i32_1 = arith.constant 0 : i32
    %c0_i32_2 = arith.constant 0 : i32
    return %c0_i32, %c0_i32_0, %c0_i32_1 : i32, i32, i32
  }
  func.func @transform_3(%arg0: i32) -> (i32, i32) {
    %c0_i32 = arith.constant 0 : i32
    %c0_i32_0 = arith.constant 0 : i32
    return %arg0, %c0_i32 : i32, i32
  }
}

</mosaic_0001>

<bundles_post_ra>
// kernel: _net_forward_impl.1
= control target key start
LH: loop header
LB: loop body
LE: loop exit
PB: predicated region body
PF: predicated region fallthrough
CT: control target
= control target key end

     0   :  { %v857_v1 = vmov 0.0   ;;  %vm33_vm0 = vcmask 130048   ;;  %vm858_vm1 = vmmov 0   ;;  %s1052_s0 = inlined_call_operand.vmem [shape: f32[8,16], index: 0, kind: input, shape index: {}]   ;;  %s1053_s1 = inlined_call_operand.vmem [shape: bf16[5,128,128], index: 1, kind: input, shape index: {}]   ;;  %s1054_s2 = inlined_call_operand.vmem [shape: f32[5,1,128], index: 2, kind: input, shape index: {}]   ;;  %s1055_s3 = inlined_call_operand.hbm [shape: f32[8,128], index: 3, kind: output, shape index: {}]  }
   0x1   :  { %v794_v0 = vld [vmem:[%s1053_s1] sm:$0xff]   ;;  %705 = vmatprep.subr.bf16.mxu0 %v857_v1  ;;  %711 = vmatprep.subr.bf16.mxu1 %v857_v1  ;;  %v796_v5 = vld [vmem:[%s1053_s1 + $0x48] sm:$0xff]   ;;  %v797_v6 = vld [vmem:[%s1053_s1 + $0x50] sm:$0xff]  }
   0x2   :  { %v18_v2 = vld [vmem:[%s1052_s0] sm:$0xff]  ;;  %706 = vmatpush3.bf16.msra.mxu0 %v794_v0  ;;  %707 = vmatprep.mubr.msk.bf16.mxu0 %vm858_vm1, %v857_v1  ;;  %v798_v7 = vld [vmem:[%s1053_s1 + $0x58] sm:$0xff]   ;;  %v800_v9 = vld [vmem:[%s1053_s1 + $0x68] sm:$0xff]  }
   0x3   :  { %v795_v3 = vld [vmem:[%s1053_s1 + $0x40] sm:$0xff]   ;;  %v19_v4 = vpack.c.bf16 %v18_v2, %v18_v2  ;;  %727 = vmatprep.mubr.msk.bf16.mxu1 %vm858_vm1, %v857_v1  ;;  %731 = vmatprep.subr.bf16.mxu0 %v857_v1 }
   0x4   :  { %712 = vmatpush3.bf16.msra.mxu1 %v795_v3  ;;  %v799_v8 = vld [vmem:[%s1053_s1 + $0x60] sm:$0xff]  }
   0x5   :  { %713 = vmatprep.subr.bf16.mxu1 %v857_v1  ;;  %708 = vmatmul.mubr.msk.bf16.vlgmr.msra.gmra.mrb[0].mxu0 %vm33_vm0, %v19_v4 }
   0x6   :  { %747 = vmatprep.mubr.msk.bf16.mxu0 %vm858_vm1, %v857_v1 }
   0x8   :  { %714 = vmatpush3.bf16.msra.mxu1 %v796_v5 }
   0x9   :  { %715 = vmatprep.subr.bf16.mxu1 %v857_v1 }
   0xc   :  { %716 = vmatpush3.bf16.msra.mxu1 %v797_v6 }
   0xd   :  { %717 = vmatprep.subr.bf16.mxu1 %v857_v1 }
  0x10   :  { %718 = vmatpush3.bf16.msra.mxu1 %v798_v7 }
  0x11   :  { %719 = vmatprep.subr.bf16.mxu1 %v857_v1 }
  0x14   :  { %720 = vmatpush3.bf16.msra.mxu1 %v799_v8 }
  0x15   :  { %721 = vmatprep.subr.bf16.mxu1 %v857_v1 }
  0x18   :  { %722 = vmatpush3.bf16.msra.mxu1 %v800_v9 }
  0x19   :  { %723 = vmatprep.subr.bf16.mxu1 %v857_v1 }
  0x1a   :  { %8 = vsyncpa [#allocation3], 0  ;;  %v801_v10 = vld [vmem:[%s1053_s1 + $0x70] sm:$0xff]   ;;  %v802_v11 = vld [vmem:[%s1053_s1 + $0x78] sm:$0xff]   ;;  %s859_s5 = smov [#allocation2]  }
  0x1b   :  { %v803_v12 = vld [vmem:[%s1053_s1 + $0x80] sm:$0xff]   ;;  %v804_v13 = vld [vmem:[%s1053_s1 + $0x88] sm:$0xff]   ;;  %v805_v14 = vld [vmem:[%s1053_s1 + $0x90] sm:$0xff]   ;;  %s551_s6 = sshll.u32 %s859_s5, 4  ;;  %s552_s6 = int_to_ptr.vmem [resolvable:$true] %s551_s6 }
  0x1c   :  { %724 = vmatpush3.bf16.msra.mxu1 %v801_v10  ;;  %732 = vmatpush3.bf16.msra.mxu0 %v803_v12  ;;  %v806_v15 = vld [vmem:[%s1053_s1 + $0x98] sm:$0xff]   ;;  %v559_v16 = vld [vmem:[%s1054_s2] ss:$0 sm:$0xff]  ;;  %v808_v26 = vld [vmem:[%s1053_s1 + $0xa8] sm:$0xff]   ;;  %s833_s7 = scalar_lea.vmem %s552_s6, 128  ;;  %p838_p1 = scmp.lt.s32.totalorder %s552_s6, %s552_s6 }
  0x1d   :  { %725 = vmatprep.subr.bf16.mxu1 %v857_v1  ;;  %733 = vmatprep.subr.bf16.mxu0 %v857_v1  ;;  %v807_v25 = vld [vmem:[%s1053_s1 + $0xa0] sm:$0xff]   ;;  %v809_v27 = vld [vmem:[%s1053_s1 + $0xb0] sm:$0xff]   ;;  %v810_v28 = vld [vmem:[%s1053_s1 + $0xb8] sm:$0xff]   ;;  %p834_p0 = scmp.ne.s32.totalorder %s552_s6, %s833_s7  ;;  %p839_p2 = scmp.lt.s32.totalorder %s833_s7, %s833_s7 }
  0x1e   :  { %v811_v29 = vld [vmem:[%s1053_s1 + $0xc0] sm:$0xff]   ;;  %v812_v30 = vld [vmem:[%s1053_s1 + $0xc8] sm:$0xff]   ;;  %v813_v31 = vld [vmem:[%s1053_s1 + $0xd0] sm:$0xff]  }
  0x1f   :  { %v814_v32 = vld [vmem:[%s1053_s1 + $0xd8] sm:$0xff]   ;;  %v815_v33 = vld [vmem:[%s1053_s1 + $0xe0] sm:$0xff]   ;;  %v816_v34 = vld [vmem:[%s1053_s1 + $0xe8] sm:$0xff]   ;;  %p840_p3 = por %p839_p2, %p838_p1 }
  0x20   :  { %726 = vmatpush3.bf16.msra.mxu1 %v802_v11  ;;  %734 = vmatpush3.bf16.msra.mxu0 %v804_v13  ;;  %v579_v35 = vld [vmem:[%s1054_s2 + $0x1] ss:$0 sm:$0xff]  ;;  %v817_v43 = vld [vmem:[%s1053_s1 + $0xf0] sm:$0xff]   ;;  %v818_v44 = vld [vmem:[%s1053_s1 + $0xf8] sm:$0xff]  }
  0x21   :  { %751 = vmatprep.subr.bf16.mxu1 %v857_v1  ;;  %735 = vmatprep.subr.bf16.mxu0 %v857_v1  ;;  %v605_v45 = vld [vmem:[%s1054_s2 + $0x2] ss:$0 sm:$0xff]  ;;  %v820_v54 = vld [vmem:[%s1053_s1 + $0x108] sm:$0xff]   ;;  %v821_v55 = vld [vmem:[%s1053_s1 + $0x110] sm:$0xff]   ;;  %p841_p4 = pnand %p840_p3, %p834_p0 }
  0x22   :  { %v819_v53 = vld [vmem:[%s1053_s1 + $0x100] sm:$0xff]   ;;  %v822_v56 = vld [vmem:[%s1053_s1 + $0x118] sm:$0xff]   ;;  %v824_v58 = vld [vmem:[%s1053_s1 + $0x128] sm:$0xff]  }
  0x23   :  { %v823_v57 = vld [vmem:[%s1053_s1 + $0x120] sm:$0xff]   ;;  %v825_v59 = vld [vmem:[%s1053_s1 + $0x130] sm:$0xff]   ;;  %v826_v60 = vld [vmem:[%s1053_s1 + $0x138] sm:$0xff]  }
  0x24   :  { %736 = vmatpush3.bf16.msra.mxu0 %v805_v14  ;;  %v631_v61 = vld [vmem:[%s1054_s2 + $0x3] ss:$0 sm:$0xff] }
  0x25   :  { %737 = vmatprep.subr.bf16.mxu0 %v857_v1 }
  0x28   :  { %738 = vmatpush3.bf16.msra.mxu0 %v806_v15 }
  0x29   :  { %739 = vmatprep.subr.bf16.mxu0 %v857_v1 }
  0x2c   :  { %740 = vmatpush3.bf16.msra.mxu0 %v807_v25 }
  0x2d   :  { %741 = vmatprep.subr.bf16.mxu0 %v857_v1 }
  0x30   :  { %742 = vmatpush3.bf16.msra.mxu0 %v808_v26 }
  0x31   :  { %743 = vmatprep.subr.bf16.mxu0 %v857_v1 }
  0x34   :  { %744 = vmatpush3.bf16.msra.mxu0 %v809_v27 }
  0x35   :  { %745 = vmatprep.subr.bf16.mxu0 %v857_v1 }
  0x38   :  { %746 = vmatpush3.bf16.msra.mxu0 %v810_v28 }
  0x39   :  { %771 = vmatprep.subr.bf16.mxu0 %v857_v1 }
  0xd8   :  { %v71_v17 = vpop.f32.mrb[0].mxu0 }
  0xd9   :  { %v72_v18 = vadd.f32 %v559_v16, %v71_v17  ;;  %v709_v19 = vpop.f32.mrb[1].mxu0 }
  0xda   :  { %v74_v20 = vpop.f32.mrb[2].mxu0 }
  0xdb   :  { %vm77_vm2 = vcmp.gt.f32.partialorder %v72_v18, 0.0  ;;  %v78_v21 = vmul.f32 0.01, %v72_v18  ;;  %v710_v22 = vpop.f32.mrb[3].mxu0 }
  0xdd   :  { %v79_v23 = vsel %vm77_vm2, %v72_v18, %v78_v21 }
  0xde   :  { %v80_v24 = vpack.c.bf16 %v79_v23, %v79_v23 }
  0xe0   :  { %728 = vmatmul.mubr.bf16.vlgmr.msra.gmra.mrb[0].mxu1 %v80_v24 }
  0xe1   :  { %767 = vmatprep.mubr.msk.bf16.mxu1 %vm858_vm1, %v857_v1  ;;  %752 = vmatpush3.bf16.msra.mxu1 %v811_v29 }
  0xe2   :  { %753 = vmatprep.subr.bf16.mxu1 %v857_v1 }
  0xe5   :  { %754 = vmatpush3.bf16.msra.mxu1 %v812_v30 }
  0xe6   :  { %755 = vmatprep.subr.bf16.mxu1 %v857_v1 }
  0xe9   :  { %756 = vmatpush3.bf16.msra.mxu1 %v813_v31 }
  0xea   :  { %757 = vmatprep.subr.bf16.mxu1 %v857_v1 }
  0xed   :  { %758 = vmatpush3.bf16.msra.mxu1 %v814_v32 }
  0xee   :  { %759 = vmatprep.subr.bf16.mxu1 %v857_v1 }
  0xf1   :  { %760 = vmatpush3.bf16.msra.mxu1 %v815_v33 }
  0xf2   :  { %761 = vmatprep.subr.bf16.mxu1 %v857_v1 }
  0xf5   :  { %762 = vmatpush3.bf16.msra.mxu1 %v816_v34 }
  0xf6   :  { %763 = vmatprep.subr.bf16.mxu1 %v857_v1 }
  0xf9   :  { %764 = vmatpush3.bf16.msra.mxu1 %v817_v43 }
  0xfa   :  { %765 = vmatprep.subr.bf16.mxu1 %v857_v1 }
  0xfd   :  { %766 = vmatpush3.bf16.msra.mxu1 %v818_v44 }
 0x1b3   :  { %v188_v36 = vpop.f32.mrb[0].mxu1 }
 0x1b4   :  { %v189_v37 = vadd.f32 %v579_v35, %v188_v36  ;;  %v729_v38 = vpop.f32.mrb[1].mxu1 }
 0x1b5   :  { %v191_v39 = vpop.f32.mrb[2].mxu1 }
 0x1b6   :  { %827 = vtanh.f32 %v189_v37  ;;  %v730_v40 = vpop.f32.mrb[3].mxu1 }
 0x1c0   :  { %v828_v41 = vpop.eup %827 }
 0x1c1   :  { %v195_v42 = vpack.c.bf16 %v828_v41, %v828_v41 }
 0x1c3   :  { %748 = vmatmul.mubr.bf16.vlgmr.msra.gmra.mrb[4].mxu0 %v195_v42 }
 0x1c4   :  { %787 = vmatprep.mubr.msk.bf16.mxu0 %vm858_vm1, %v857_v1  ;;  %772 = vmatpush3.bf16.msra.mxu0 %v819_v53 }
 0x1c5   :  { %773 = vmatprep.subr.bf16.mxu0 %v857_v1 }
 0x1c8   :  { %774 = vmatpush3.bf16.msra.mxu0 %v820_v54 }
 0x1c9   :  { %775 = vmatprep.subr.bf16.mxu0 %v857_v1 }
 0x1cc   :  { %776 = vmatpush3.bf16.msra.mxu0 %v821_v55 }
 0x1cd   :  { %777 = vmatprep.subr.bf16.mxu0 %v857_v1 }
 0x1d0   :  { %778 = vmatpush3.bf16.msra.mxu0 %v822_v56 }
 0x1d1   :  { %779 = vmatprep.subr.bf16.mxu0 %v857_v1 }
 0x1d4   :  { %780 = vmatpush3.bf16.msra.mxu0 %v823_v57 }
 0x1d5   :  { %781 = vmatprep.subr.bf16.mxu0 %v857_v1 }
 0x1d8   :  { %782 = vmatpush3.bf16.msra.mxu0 %v824_v58 }
 0x1d9   :  { %783 = vmatprep.subr.bf16.mxu0 %v857_v1 }
 0x1dc   :  { %784 = vmatpush3.bf16.msra.mxu0 %v825_v59 }
 0x1dd   :  { %785 = vmatprep.subr.bf16.mxu0 %v857_v1  ;;  %v658_v1 = vld [vmem:[%s1054_s2 + $0x4] ss:$0 sm:$0xff] }
 0x1e0   :  { %786 = vmatpush3.bf16.msra.mxu0 %v826_v60 }
 0x296   :  { %v303_v46 = vpop.f32.mrb[4].mxu0 }
 0x297   :  { %v304_v47 = vadd.f32 %v605_v45, %v303_v46  ;;  %v749_v48 = vpop.f32.mrb[5].mxu0 }
 0x298   :  { %v306_v49 = vpop.f32.mrb[6].mxu0 }
 0x299   :  { %v309_v50 = vmax.f32 %v304_v47, 0.0  ;;  %v750_v51 = vpop.f32.mrb[7].mxu0 }
 0x29b   :  { %v310_v52 = vpack.c.bf16 %v309_v50, %v309_v50 }
 0x29d   :  { %768 = vmatmul.mubr.bf16.vlgmr.msra.gmra.mrb[4].mxu1 %v310_v52 }
 0x370   :  { %v418_v62 = vpop.f32.mrb[4].mxu1 }
 0x371   :  { %v419_v63 = vadd.f32 %v631_v61, %v418_v62  ;;  %v769_v0 = vpop.f32.mrb[5].mxu1 }
 0x372   :  { %v421_v2 = vpop.f32.mrb[6].mxu1 }
 0x373   :  { %v640_v3 = vmul.f32 -1.442695, %v419_v63  ;;  %v770_v4 = vpop.f32.mrb[7].mxu1 }
 0x375   :  { %829 = vpow2.f32 %v640_v3 }
 0x37f   :  { %v830_v5 = vpop.eup %829 }
 0x380   :  { %v427_v6 = vadd.f32 1.0, %v830_v5 }
 0x382   :  { %831 = vrcp.f32 %v427_v6 }
 0x38c   :  { %v832_v7 = vpop.eup %831 }
 0x38d   :  { %v430_v8 = vpack.c.bf16 %v832_v7, %v832_v7 }
 0x38f   :  { %788 = vmatmul.mubr.bf16.vlgmr.msra.gmra.mrb[8].mxu0 %v430_v8 }
 0x462   :  { %v538_v9 = vpop.f32.mrb[8].mxu0 }
 0x463   :  { %v539_v10 = vadd.f32 %v658_v1, %v538_v9  ;;  %v789_v11 = vpop.f32.mrb[9].mxu0 }
 0x464   :  { %v541_v12 = vpop.f32.mrb[10].mxu0 }
 0x465   :  { %544 = vst [vmem:[#allocation2] sm:$0xff] %v539_v10  ;;  %v790_v13 = vpop.f32.mrb[11].mxu0 }
 0x466   :  { %844 = shalt.err (!%p841_p4)
}
 0x467   :  { %s845_s2 = scalar_lea.hbm %s1055_s3, 128 }
 0x468   :  { %p846_p5 = scmp.ne.s32.totalorder %s1055_s3, %s845_s2  ;;  %p849_p6 = scmp.lt.u32.totalorder %s845_s2, %s1055_s3 }
 0x46a   :  { %p851_p7 = pnand %p849_p6, %p846_p5 }
 0x46c   :  { %854 = shalt.err (!%p851_p7)
}
 0x46d   :  { %554 = dma.vmem_to_hbm [thread:$0]  %s552_s6, 128, %s1055_s3, [#allocation3]  }
 0x46e   :  { %855 = dma.done.wait [#allocation3], 128  }
 0x46f   :  { %856 = vsyncadd [#allocation3], 4294967168 }
 0x470   :  { %558 = vsyncpa [#allocation3], 1 }

</bundles_post_ra>
